<compile_context>
chip_gen: v7x
topology: tpu7x:2x2x1
jax: 0.10.0
libtpu: 0.0.40
codegen_flags: <defaults>
</compile_context>

<pallas_src>
import functools
import math

import jax
import jax.numpy as jnp
from jax.experimental import pallas as pl
from jax.experimental.pallas import tpu as pltpu


def transformer_layer_kernel(
    x_ref,
    wqkv_ref, bqkv_ref,
    wot_ref, bo_ref,
    g1_ref, beta1_ref,
    w1t_ref, bf1_ref, w2t_ref, bf2_ref,
    g2_ref, beta2_ref,
    out_ref, attn_ref,
    *, nhead, compute_dtype,
):
    """One grid step = one batch element (attention couples the whole sequence L)."""
    cdt = compute_dtype                       # MXU operand dtype (bf16)
    x = x_ref[0]                              # (L, D) f32
    L, D = x.shape
    dh = D // nhead
    scale = 1.0 / math.sqrt(dh)

    # --- fused QKV projection: single MXU pass with N = 3D ---
    qkv = jnp.dot(x.astype(cdt), wqkv_ref[...],
                  preferred_element_type=jnp.float32) + bqkv_ref[...]   # (L, 3D) f32
    q, k, v = qkv[:, :D], qkv[:, D:2 * D], qkv[:, 2 * D:]
    q = q * scale                             # scale q (L*D elems) instead of scores (H*L*L)

    # --- batched-head attention (heads on the leading axis, no python head loop) ---
    def heads(t):                             # (L, D) -> (nhead, L, dh)
        return pltpu.einshape("mhd->hmd", t.reshape(L, nhead, dh))

    qh, kh, vh = heads(q), heads(k), heads(v)

    s = jnp.einsum("hqd,hkd->hqk", qh.astype(cdt), kh.astype(cdt),
                   preferred_element_type=jnp.float32)                  # (nhead, L, L) f32
    # TODO(synk): attn_mask support not implemented (forward default mask=None).
    s = s - jnp.max(s, axis=-1, keepdims=True)
    e = jnp.exp(s)
    p = e * pl.reciprocal(jnp.sum(e, axis=-1, keepdims=True), approx=True)
    attn_ref[0] = p                           # single store of all heads at once

    ctx = jnp.einsum("hqk,hkd->hqd", p.astype(cdt), vh.astype(cdt),
                     preferred_element_type=jnp.float32)                # (nhead, L, dh) f32
    ctx = pltpu.einshape("hmd->mhd", ctx).reshape(L, D)                 # (L, D)

    attn_out = jnp.dot(ctx.astype(cdt), wot_ref[...],
                       preferred_element_type=jnp.float32) + bo_ref[...]

    def layer_norm(z, g, b, eps=1e-5):        # f32 VPU math everywhere
        mu = jnp.mean(z, axis=-1, keepdims=True)
        var = jnp.mean(jnp.square(z - mu), axis=-1, keepdims=True)
        return (z - mu) * jax.lax.rsqrt(var + eps) * g + b

    x1 = layer_norm(x + attn_out, g1_ref[...], beta1_ref[...])

    # --- feedforward: Linear -> ReLU -> Linear ---
    # TODO(synk): nn.Dropout(0.1) is identity in eval mode; no dropout applied here.
    h1 = jnp.maximum(
        jnp.dot(x1.astype(cdt), w1t_ref[...],
                preferred_element_type=jnp.float32) + bf1_ref[...], 0.0)
    ff = jnp.dot(h1.astype(cdt), w2t_ref[...],
                 preferred_element_type=jnp.float32) + bf2_ref[...]

    out_ref[0] = layer_norm(x1 + ff, g2_ref[...], beta2_ref[...])


def transformer_layer(x, params, nhead, compute_dtype=jnp.bfloat16):
    B, L, D = x.shape

    row = lambda b: b.reshape(1, -1).astype(jnp.float32)

    # Fused, pre-transposed MXU weights (PyTorch stores (out, in)); cast weights to bf16
    # once here, keep biases / LN params in f32.
    wqkv_t = jnp.concatenate(
        [params["wq"].T, params["wk"].T, params["wv"].T], axis=1).astype(compute_dtype)
    bqkv = jnp.concatenate(
        [params["bq"], params["bk"], params["bv"]]).reshape(1, -1).astype(jnp.float32)

    inputs = (
        x,
        wqkv_t, bqkv,
        params["wo"].T.astype(compute_dtype), row(params["bo"]),
        row(params["g1"]), row(params["beta1"]),
        params["w1"].T.astype(compute_dtype), row(params["bf1"]),
        params["w2"].T.astype(compute_dtype), row(params["bf2"]),
        row(params["g2"]), row(params["beta2"]),
    )

    def full_block(a):
        nd = a.ndim
        # Constant block index -> fetched once, stays resident in VMEM across the grid.
        return pl.BlockSpec(a.shape, lambda b, nd=nd: (0,) * nd)

    in_specs = [pl.BlockSpec((1, L, D), lambda b: (b, 0, 0))]
    in_specs += [full_block(a) for a in inputs[1:]]

    out_specs = [
        pl.BlockSpec((1, L, D), lambda b: (b, 0, 0)),
        pl.BlockSpec((1, nhead, L, L), lambda b: (b, 0, 0, 0)),
    ]
    out_shape = (
        jax.ShapeDtypeStruct((B, L, D), jnp.float32),
        jax.ShapeDtypeStruct((B, nhead, L, L), jnp.float32),
    )

    kernel = functools.partial(
        transformer_layer_kernel, nhead=nhead, compute_dtype=compute_dtype)
    return pl.pallas_call(
        kernel,
        out_shape=out_shape,
        grid_spec=pltpu.PrefetchScalarGridSpec(
            num_scalar_prefetch=0,
            grid=(B,),
            in_specs=in_specs,
            out_specs=out_specs,
        ),
        compiler_params=pltpu.CompilerParams(
            # Batch elements are fully independent -> shard across TCs on v7x.
            dimension_semantics=("parallel",),
        ),
    )(*inputs)


def reference(x, p, nhead):
    """Pure-JAX f32 reference matching PyTorch semantics (eval mode)."""
    B, L, D = x.shape
    dh = D // nhead
    q = x @ p["wq"].T + p["bq"]
    k = x @ p["wk"].T + p["bk"]
    v = x @ p["wv"].T + p["bv"]
    qh = q.reshape(B, L, nhead, dh).transpose(0, 2, 1, 3)
    kh = k.reshape(B, L, nhead, dh).transpose(0, 2, 1, 3)
    vh = v.reshape(B, L, nhead, dh).transpose(0, 2, 1, 3)
    s = jnp.einsum("bhqd,bhkd->bhqk", qh, kh) / math.sqrt(dh)
    w = jax.nn.softmax(s, axis=-1)
    o = jnp.einsum("bhqk,bhkd->bhqd", w, vh).transpose(0, 2, 1, 3).reshape(B, L, D)
    attn_out = o @ p["wo"].T + p["bo"]

    def ln(z, g, b, eps=1e-5):
        mu = z.mean(-1, keepdims=True)
        var = ((z - mu) ** 2).mean(-1, keepdims=True)
        return (z - mu) / jnp.sqrt(var + eps) * g + b

    x1 = ln(x + attn_out, p["g1"], p["beta1"])
    ff = jnp.maximum(x1 @ p["w1"].T + p["bf1"], 0.0) @ p["w2"].T + p["bf2"]
    x2 = ln(x1 + ff, p["g2"], p["beta2"])
    return x2, w


def make_params(key, d_model, nhead, ff_dim):
    ks = jax.random.split(key, 8)
    sd = 1.0 / math.sqrt(d_model)
    sf = 1.0 / math.sqrt(ff_dim)
    return {
        "wq": jax.random.normal(ks[0], (d_model, d_model), jnp.float32) * sd,
        "wk": jax.random.normal(ks[1], (d_model, d_model), jnp.float32) * sd,
        "wv": jax.random.normal(ks[2], (d_model, d_model), jnp.float32) * sd,
        "bq": jnp.zeros((d_model,), jnp.float32),
        "bk": jnp.zeros((d_model,), jnp.float32),
        "bv": jnp.zeros((d_model,), jnp.float32),
        "wo": jax.random.normal(ks[3], (d_model, d_model), jnp.float32) * sd,
        "bo": jax.random.normal(ks[4], (d_model,), jnp.float32) * 0.02,
        "g1": jnp.ones((d_model,), jnp.float32),
        "beta1": jnp.zeros((d_model,), jnp.float32),
        "w1": jax.random.normal(ks[5], (ff_dim, d_model), jnp.float32) * sd,
        "bf1": jax.random.normal(ks[6], (ff_dim,), jnp.float32) * 0.02,
        "w2": jax.random.normal(ks[7], (d_model, ff_dim), jnp.float32) * sf,
        "bf2": jnp.zeros((d_model,), jnp.float32),
        "g2": jnp.ones((d_model,), jnp.float32),
        "beta2": jnp.zeros((d_model,), jnp.float32),
    }


if __name__ == "__main__":
    B, L, D, H, FF = 2, 8, 32, 4, 64
    key = jax.random.PRNGKey(0)
    kx, kp = jax.random.split(key)
    x = jax.random.normal(kx, (B, L, D), jnp.float32)
    params = make_params(kp, D, H, FF)

    out, attn_w = transformer_layer(x, params, H)
    jax.block_until_ready((out, attn_w))

    ref_out, ref_w = reference(x, params, H)
    assert out.shape == (B, L, D) and attn_w.shape == (B, H, L, L)
    # Tolerances loosened vs. the f32 reference because MXU matmuls run in bf16
    # (f32 accumulation) and softmax uses the approximate EUP reciprocal.
    assert jnp.allclose(out, ref_out, atol=7.5e-2, rtol=7.5e-2), "output mismatch"
    assert jnp.allclose(attn_w, ref_w, atol=2e-2, rtol=2e-2), "attn weights mismatch"
    print("KERNEL_OK")
</pallas_src>

<mosaic_0001>
module attributes {stable_mosaic.version = 11 : i64} {
  func.func @transformer_layer_kernel(%arg0: i32, %arg1: memref<1x8x32xf32, #tpu.memory_space<vmem>>, %arg2: memref<32x96xbf16, #tpu.memory_space<vmem>>, %arg3: memref<1x96xf32, #tpu.memory_space<vmem>>, %arg4: memref<32x32xbf16, #tpu.memory_space<vmem>>, %arg5: memref<1x32xf32, #tpu.memory_space<vmem>>, %arg6: memref<1x32xf32, #tpu.memory_space<vmem>>, %arg7: memref<1x32xf32, #tpu.memory_space<vmem>>, %arg8: memref<32x64xbf16, #tpu.memory_space<vmem>>, %arg9: memref<1x64xf32, #tpu.memory_space<vmem>>, %arg10: memref<64x32xbf16, #tpu.memory_space<vmem>>, %arg11: memref<1x32xf32, #tpu.memory_space<vmem>>, %arg12: memref<1x32xf32, #tpu.memory_space<vmem>>, %arg13: memref<1x32xf32, #tpu.memory_space<vmem>>, %arg14: memref<1x8x32xf32, #tpu.memory_space<vmem>>, %arg15: memref<1x4x8x8xf32, #tpu.memory_space<vmem>>) attributes {dimension_semantics = [#tpu.dimension_semantics<parallel>], iteration_bounds = array<i64: 2>, scalar_prefetch = 0 : i64, scratch_operands = 0 : i64, tpu.core_type = #tpu.core_type<tc>, window_params = [{transform_indices = @transform_0, window_bounds = array<i64: 1, 8, 32>}, {pipeline_mode = #tpu.pipeline_mode<synchronous>, transform_indices = @transform_1, window_bounds = array<i64: 32, 96>}, {pipeline_mode = #tpu.pipeline_mode<synchronous>, transform_indices = @transform_2, window_bounds = array<i64: 1, 96>}, {pipeline_mode = #tpu.pipeline_mode<synchronous>, transform_indices = @transform_3, window_bounds = array<i64: 32, 32>}, {pipeline_mode = #tpu.pipeline_mode<synchronous>, transform_indices = @transform_4, window_bounds = array<i64: 1, 32>}, {pipeline_mode = #tpu.pipeline_mode<synchronous>, transform_indices = @transform_5, window_bounds = array<i64: 1, 32>}, {pipeline_mode = #tpu.pipeline_mode<synchronous>, transform_indices = @transform_6, window_bounds = array<i64: 1, 32>}, {pipeline_mode = #tpu.pipeline_mode<synchronous>, transform_indices = @transform_7, window_bounds = array<i64: 32, 64>}, {pipeline_mode = #tpu.pipeline_mode<synchronous>, transform_indices = @transform_8, window_bounds = array<i64: 1, 64>}, {pipeline_mode = #tpu.pipeline_mode<synchronous>, transform_indices = @transform_9, window_bounds = array<i64: 64, 32>}, {pipeline_mode = #tpu.pipeline_mode<synchronous>, transform_indices = @transform_10, window_bounds = array<i64: 1, 32>}, {pipeline_mode = #tpu.pipeline_mode<synchronous>, transform_indices = @transform_11, window_bounds = array<i64: 1, 32>}, {pipeline_mode = #tpu.pipeline_mode<synchronous>, transform_indices = @transform_12, window_bounds = array<i64: 1, 32>}, {transform_indices = @transform_13, window_bounds = array<i64: 1, 8, 32>}, {transform_indices = @transform_14, window_bounds = array<i64: 1, 4, 8, 8>}]} {
    %c0 = arith.constant 0 : index
    %c0_0 = arith.constant 0 : index
    %c0_1 = arith.constant 0 : index
    %0 = vector.load %arg1[%c0, %c0_0, %c0_1] : memref<1x8x32xf32, #tpu.memory_space<vmem>>, vector<1x8x32xf32>
    %1 = vector.shape_cast %0 : vector<1x8x32xf32> to vector<8x32xf32>
    %2 = arith.truncf %1 : vector<8x32xf32> to vector<8x32xbf16>
    %c0_2 = arith.constant 0 : index
    %c0_3 = arith.constant 0 : index
    %3 = vector.load %arg2[%c0_2, %c0_3] : memref<32x96xbf16, #tpu.memory_space<vmem>>, vector<32x96xbf16>
    %cst = arith.constant dense<0.000000e+00> : vector<8x96xf32>
    %4 = tpu.matmul %2, %3, %cst {dimension_numbers = #tpu.dot_dimension_numbers<[1], [0], [0], [1], [0, 0, 1, 1], [], []>} : vector<8x32xbf16>, vector<32x96xbf16>, vector<8x96xf32> -> vector<8x96xf32>
    %c0_4 = arith.constant 0 : index
    %c0_5 = arith.constant 0 : index
    %5 = vector.load %arg3[%c0_4, %c0_5] : memref<1x96xf32, #tpu.memory_space<vmem>>, vector<1x96xf32>
    %6 = vector.broadcast %5 : vector<1x96xf32> to vector<8x96xf32>
    %7 = arith.addf %4, %6 : vector<8x96xf32>
    %8 = vector.extract_strided_slice %7 {offsets = [0, 0], sizes = [8, 32], strides = [1, 1]} : vector<8x96xf32> to vector<8x32xf32>
    %9 = vector.extract_strided_slice %7 {offsets = [0, 32], sizes = [8, 32], strides = [1, 1]} : vector<8x96xf32> to vector<8x32xf32>
    %10 = vector.extract_strided_slice %7 {offsets = [0, 64], sizes = [8, 32], strides = [1, 1]} : vector<8x96xf32> to vector<8x32xf32>
    %cst_6 = arith.constant 0.353553385 : f32
    %11 = vector.broadcast %cst_6 : f32 to vector<8x32xf32>
    %12 = arith.mulf %8, %11 : vector<8x32xf32>
    %13 = vector.shape_cast %12 : vector<8x32xf32> to vector<8x4x8xf32>
    %14 = tpu.transpose %13, [1, 0, 2] : vector<8x4x8xf32> -> vector<4x8x8xf32>
    %15 = vector.shape_cast %9 : vector<8x32xf32> to vector<8x4x8xf32>
    %16 = tpu.transpose %15, [1, 0, 2] : vector<8x4x8xf32> -> vector<4x8x8xf32>
    %17 = vector.shape_cast %10 : vector<8x32xf32> to vector<8x4x8xf32>
    %18 = tpu.transpose %17, [1, 0, 2] : vector<8x4x8xf32> -> vector<4x8x8xf32>
    %19 = arith.truncf %14 : vector<4x8x8xf32> to vector<4x8x8xbf16>
    %20 = arith.truncf %16 : vector<4x8x8xf32> to vector<4x8x8xbf16>
    "tpu.trace_start"() <{level = 10 : i32, message = "hqd,hkd->hqk"}> : () -> ()
    %cst_7 = arith.constant dense<0.000000e+00> : vector<4x8x8xf32>
    %21 = tpu.matmul %19, %20, %cst_7 {dimension_numbers = #tpu.dot_dimension_numbers<[2], [2], [1], [1], [0, 0, 0, 1, 1, 1], [0], [0]>} : vector<4x8x8xbf16>, vector<4x8x8xbf16>, vector<4x8x8xf32> -> vector<4x8x8xf32>
    "tpu.trace_stop"() : () -> ()
    %cst_8 = arith.constant dense<0xFF800000> : vector<4x8xf32>
    %22 = vector.multi_reduction <maximumf>, %21, %cst_8 [2] : vector<4x8x8xf32> to vector<4x8xf32>
    %23 = vector.shape_cast %22 : vector<4x8xf32> to vector<4x8x1xf32>
    %24 = vector.broadcast %23 : vector<4x8x1xf32> to vector<4x8x8xf32>
    %25 = arith.subf %21, %24 : vector<4x8x8xf32>
    %26 = math.exp %25 : vector<4x8x8xf32>
    %cst_9 = arith.constant dense<0.000000e+00> : vector<4x8xf32>
    %27 = vector.multi_reduction <add>, %26, %cst_9 [2] : vector<4x8x8xf32> to vector<4x8xf32>
    %28 = vector.shape_cast %27 : vector<4x8xf32> to vector<4x8x1xf32>
    %29 = tpu.reciprocal %28 {approx = true} : vector<4x8x1xf32> -> vector<4x8x1xf32>
    %30 = vector.broadcast %29 : vector<4x8x1xf32> to vector<4x8x8xf32>
    %31 = arith.mulf %26, %30 : vector<4x8x8xf32>
    %c0_10 = arith.constant 0 : index
    %c0_11 = arith.constant 0 : index
    %c0_12 = arith.constant 0 : index
    %c0_13 = arith.constant 0 : index
    %32 = vector.load %arg15[%c0_10, %c0_11, %c0_12, %c0_13] : memref<1x4x8x8xf32, #tpu.memory_space<vmem>>, vector<1x4x8x8xf32>
    %33 = vector.shape_cast %32 : vector<1x4x8x8xf32> to vector<4x8x8xf32>
    %34 = vector.shape_cast %31 : vector<4x8x8xf32> to vector<1x4x8x8xf32>
    tpu.vector_store %arg15[%c0_10, %c0_11, %c0_12, %c0_13], %34 {strides = array<i32>} : memref<1x4x8x8xf32, #tpu.memory_space<vmem>>, vector<1x4x8x8xf32>,
    %35 = arith.truncf %31 : vector<4x8x8xf32> to vector<4x8x8xbf16>
    %36 = arith.truncf %18 : vector<4x8x8xf32> to vector<4x8x8xbf16>
    "tpu.trace_start"() <{level = 10 : i32, message = "hqk,hkd->hqd"}> : () -> ()
    %cst_14 = arith.constant dense<0.000000e+00> : vector<4x8x8xf32>
    %37 = tpu.matmul %35, %36, %cst_14 {dimension_numbers = #tpu.dot_dimension_numbers<[2], [1], [1], [2], [0, 0, 0, 1, 1, 2], [0], [0]>} : vector<4x8x8xbf16>, vector<4x8x8xbf16>, vector<4x8x8xf32> -> vector<4x8x8xf32>
    "tpu.trace_stop"() : () -> ()
    %38 = tpu.transpose %37, [1, 0, 2] : vector<4x8x8xf32> -> vector<8x4x8xf32>
    %39 = vector.shape_cast %38 : vector<8x4x8xf32> to vector<8x32xf32>
    %40 = arith.truncf %39 : vector<8x32xf32> to vector<8x32xbf16>
    %c0_15 = arith.constant 0 : index
    %c0_16 = arith.constant 0 : index
    %41 = vector.load %arg4[%c0_15, %c0_16] : memref<32x32xbf16, #tpu.memory_space<vmem>>, vector<32x32xbf16>
    %cst_17 = arith.constant dense<0.000000e+00> : vector<8x32xf32>
    %42 = tpu.matmul %40, %41, %cst_17 {dimension_numbers = #tpu.dot_dimension_numbers<[1], [0], [0], [1], [0, 0, 1, 1], [], []>} : vector<8x32xbf16>, vector<32x32xbf16>, vector<8x32xf32> -> vector<8x32xf32>
    %c0_18 = arith.constant 0 : index
    %c0_19 = arith.constant 0 : index
    %43 = vector.load %arg5[%c0_18, %c0_19] : memref<1x32xf32, #tpu.memory_space<vmem>>, vector<1x32xf32>
    %44 = vector.broadcast %43 : vector<1x32xf32> to vector<8x32xf32>
    %45 = arith.addf %42, %44 : vector<8x32xf32>
    %46 = arith.addf %1, %45 : vector<8x32xf32>
    %c0_20 = arith.constant 0 : index
    %c0_21 = arith.constant 0 : index
    %47 = vector.load %arg6[%c0_20, %c0_21] : memref<1x32xf32, #tpu.memory_space<vmem>>, vector<1x32xf32>
    %c0_22 = arith.constant 0 : index
    %c0_23 = arith.constant 0 : index
    %48 = vector.load %arg7[%c0_22, %c0_23] : memref<1x32xf32, #tpu.memory_space<vmem>>, vector<1x32xf32>
    %cst_24 = arith.constant dense<0.000000e+00> : vector<8xf32>
    %49 = vector.multi_reduction <add>, %46, %cst_24 [1] : vector<8x32xf32> to vector<8xf32>
    %50 = vector.shape_cast %49 : vector<8xf32> to vector<8x1xf32>
    %cst_25 = arith.constant 3.200000e+01 : f32
    %51 = vector.broadcast %cst_25 : f32 to vector<8x1xf32>
    %52 = arith.divf %50, %51 : vector<8x1xf32>
    %53 = vector.broadcast %52 : vector<8x1xf32> to vector<8x32xf32>
    %54 = arith.subf %46, %53 : vector<8x32xf32>
    %55 = arith.mulf %54, %54 : vector<8x32xf32>
    %cst_26 = arith.constant dense<0.000000e+00> : vector<8xf32>
    %56 = vector.multi_reduction <add>, %55, %cst_26 [1] : vector<8x32xf32> to vector<8xf32>
    %57 = vector.shape_cast %56 : vector<8xf32> to vector<8x1xf32>
    %cst_27 = arith.constant 3.200000e+01 : f32
    %58 = vector.broadcast %cst_27 : f32 to vector<8x1xf32>
    %59 = arith.divf %57, %58 : vector<8x1xf32>
    %60 = vector.broadcast %52 : vector<8x1xf32> to vector<8x32xf32>
    %61 = arith.subf %46, %60 : vector<8x32xf32>
    %cst_28 = arith.constant 9.99999974E-6 : f32
    %62 = vector.broadcast %cst_28 : f32 to vector<8x1xf32>
    %63 = arith.addf %59, %62 : vector<8x1xf32>
    %64 = math.rsqrt %63 : vector<8x1xf32>
    %65 = vector.broadcast %64 : vector<8x1xf32> to vector<8x32xf32>
    %66 = arith.mulf %61, %65 : vector<8x32xf32>
    %67 = vector.broadcast %47 : vector<1x32xf32> to vector<8x32xf32>
    %68 = arith.mulf %66, %67 : vector<8x32xf32>
    %69 = vector.broadcast %48 : vector<1x32xf32> to vector<8x32xf32>
    %70 = arith.addf %68, %69 : vector<8x32xf32>
    %71 = arith.truncf %70 : vector<8x32xf32> to vector<8x32xbf16>
    %c0_29 = arith.constant 0 : index
    %c0_30 = arith.constant 0 : index
    %72 = vector.load %arg8[%c0_29, %c0_30] : memref<32x64xbf16, #tpu.memory_space<vmem>>, vector<32x64xbf16>
    %cst_31 = arith.constant dense<0.000000e+00> : vector<8x64xf32>
    %73 = tpu.matmul %71, %72, %cst_31 {dimension_numbers = #tpu.dot_dimension_numbers<[1], [0], [0], [1], [0, 0, 1, 1], [], []>} : vector<8x32xbf16>, vector<32x64xbf16>, vector<8x64xf32> -> vector<8x64xf32>
    %c0_32 = arith.constant 0 : index
    %c0_33 = arith.constant 0 : index
    %74 = vector.load %arg9[%c0_32, %c0_33] : memref<1x64xf32, #tpu.memory_space<vmem>>, vector<1x64xf32>
    %75 = vector.broadcast %74 : vector<1x64xf32> to vector<8x64xf32>
    %76 = arith.addf %73, %75 : vector<8x64xf32>
    %cst_34 = arith.constant 0.000000e+00 : f32
    %77 = vector.broadcast %cst_34 : f32 to vector<8x64xf32>
    %78 = arith.maximumf %76, %77 : vector<8x64xf32>
    %79 = arith.truncf %78 : vector<8x64xf32> to vector<8x64xbf16>
    %c0_35 = arith.constant 0 : index
    %c0_36 = arith.constant 0 : index
    %80 = vector.load %arg10[%c0_35, %c0_36] : memref<64x32xbf16, #tpu.memory_space<vmem>>, vector<64x32xbf16>
    %cst_37 = arith.constant dense<0.000000e+00> : vector<8x32xf32>
    %81 = tpu.matmul %79, %80, %cst_37 {dimension_numbers = #tpu.dot_dimension_numbers<[1], [0], [0], [1], [0, 0, 1, 1], [], []>} : vector<8x64xbf16>, vector<64x32xbf16>, vector<8x32xf32> -> vector<8x32xf32>
    %c0_38 = arith.constant 0 : index
    %c0_39 = arith.constant 0 : index
    %82 = vector.load %arg11[%c0_38, %c0_39] : memref<1x32xf32, #tpu.memory_space<vmem>>, vector<1x32xf32>
    %83 = vector.broadcast %82 : vector<1x32xf32> to vector<8x32xf32>
    %84 = arith.addf %81, %83 : vector<8x32xf32>
    %85 = arith.addf %70, %84 : vector<8x32xf32>
    %c0_40 = arith.constant 0 : index
    %c0_41 = arith.constant 0 : index
    %86 = vector.load %arg12[%c0_40, %c0_41] : memref<1x32xf32, #tpu.memory_space<vmem>>, vector<1x32xf32>
    %c0_42 = arith.constant 0 : index
    %c0_43 = arith.constant 0 : index
    %87 = vector.load %arg13[%c0_42, %c0_43] : memref<1x32xf32, #tpu.memory_space<vmem>>, vector<1x32xf32>
    %cst_44 = arith.constant dense<0.000000e+00> : vector<8xf32>
    %88 = vector.multi_reduction <add>, %85, %cst_44 [1] : vector<8x32xf32> to vector<8xf32>
    %89 = vector.shape_cast %88 : vector<8xf32> to vector<8x1xf32>
    %cst_45 = arith.constant 3.200000e+01 : f32
    %90 = vector.broadcast %cst_45 : f32 to vector<8x1xf32>
    %91 = arith.divf %89, %90 : vector<8x1xf32>
    %92 = vector.broadcast %91 : vector<8x1xf32> to vector<8x32xf32>
    %93 = arith.subf %85, %92 : vector<8x32xf32>
    %94 = arith.mulf %93, %93 : vector<8x32xf32>
    %cst_46 = arith.constant dense<0.000000e+00> : vector<8xf32>
    %95 = vector.multi_reduction <add>, %94, %cst_46 [1] : vector<8x32xf32> to vector<8xf32>
    %96 = vector.shape_cast %95 : vector<8xf32> to vector<8x1xf32>
    %cst_47 = arith.constant 3.200000e+01 : f32
    %97 = vector.broadcast %cst_47 : f32 to vector<8x1xf32>
    %98 = arith.divf %96, %97 : vector<8x1xf32>
    %99 = vector.broadcast %91 : vector<8x1xf32> to vector<8x32xf32>
    %100 = arith.subf %85, %99 : vector<8x32xf32>
    %cst_48 = arith.constant 9.99999974E-6 : f32
    %101 = vector.broadcast %cst_48 : f32 to vector<8x1xf32>
    %102 = arith.addf %98, %101 : vector<8x1xf32>
    %103 = math.rsqrt %102 : vector<8x1xf32>
    %104 = vector.broadcast %103 : vector<8x1xf32> to vector<8x32xf32>
    %105 = arith.mulf %100, %104 : vector<8x32xf32>
    %106 = vector.broadcast %86 : vector<1x32xf32> to vector<8x32xf32>
    %107 = arith.mulf %105, %106 : vector<8x32xf32>
    %108 = vector.broadcast %87 : vector<1x32xf32> to vector<8x32xf32>
    %109 = arith.addf %107, %108 : vector<8x32xf32>
    %c0_49 = arith.constant 0 : index
    %c0_50 = arith.constant 0 : index
    %c0_51 = arith.constant 0 : index
    %110 = vector.load %arg14[%c0_49, %c0_50, %c0_51] : memref<1x8x32xf32, #tpu.memory_space<vmem>>, vector<1x8x32xf32>
    %111 = vector.shape_cast %110 : vector<1x8x32xf32> to vector<8x32xf32>
    %112 = vector.shape_cast %109 : vector<8x32xf32> to vector<1x8x32xf32>
    tpu.vector_store %arg14[%c0_49, %c0_50, %c0_51], %112 {strides = array<i32>} : memref<1x8x32xf32, #tpu.memory_space<vmem>>, vector<1x8x32xf32>,
    return
  }
  func.func @transform_0(%arg0: i32) -> (i32, i32, i32) {
    %c0_i32 = arith.constant 0 : i32
    %c0_i32_0 = arith.constant 0 : i32
    %c0_i32_1 = arith.constant 0 : i32
    return %arg0, %c0_i32, %c0_i32_0 : i32, i32, i32
  }
  func.func @transform_1(%arg0: i32) -> (i32, i32) {
    %c0_i32 = arith.constant 0 : i32
    %c0_i32_0 = arith.constant 0 : i32
    %c0_i32_1 = arith.constant 0 : i32
    return %c0_i32, %c0_i32_0 : i32, i32
  }
  func.func @transform_2(%arg0: i32) -> (i32, i32) {
    %c0_i32 = arith.constant 0 : i32
    %c0_i32_0 = arith.constant 0 : i32
    %c0_i32_1 = arith.constant 0 : i32
    return %c0_i32, %c0_i32_0 : i32, i32
  }
  func.func @transform_3(%arg0: i32) -> (i32, i32) {
    %c0_i32 = arith.constant 0 : i32
    %c0_i32_0 = arith.constant 0 : i32
    %c0_i32_1 = arith.constant 0 : i32
    return %c0_i32, %c0_i32_0 : i32, i32
  }
  func.func @transform_4(%arg0: i32) -> (i32, i32) {
    %c0_i32 = arith.constant 0 : i32
    %c0_i32_0 = arith.constant 0 : i32
    %c0_i32_1 = arith.constant 0 : i32
    return %c0_i32, %c0_i32_0 : i32, i32
  }
  func.func @transform_5(%arg0: i32) -> (i32, i32) {
    %c0_i32 = arith.constant 0 : i32
    %c0_i32_0 = arith.constant 0 : i32
    %c0_i32_1 = arith.constant 0 : i32
    return %c0_i32, %c0_i32_0 : i32, i32
  }
  func.func @transform_6(%arg0: i32) -> (i32, i32) {
    %c0_i32 = arith.constant 0 : i32
    %c0_i32_0 = arith.constant 0 : i32
    %c0_i32_1 = arith.constant 0 : i32
    return %c0_i32, %c0_i32_0 : i32, i32
  }
  func.func @transform_7(%arg0: i32) -> (i32, i32) {
    %c0_i32 = arith.constant 0 : i32
    %c0_i32_0 = arith.constant 0 : i32
    %c0_i32_1 = arith.constant 0 : i32
    return %c0_i32, %c0_i32_0 : i32, i32
  }
  func.func @transform_8(%arg0: i32) -> (i32, i32) {
    %c0_i32 = arith.constant 0 : i32
    %c0_i32_0 = arith.constant 0 : i32
    %c0_i32_1 = arith.constant 0 : i32
    return %c0_i32, %c0_i32_0 : i32, i32
  }
  func.func @transform_9(%arg0: i32) -> (i32, i32) {
    %c0_i32 = arith.constant 0 : i32
    %c0_i32_0 = arith.constant 0 : i32
    %c0_i32_1 = arith.constant 0 : i32
    return %c0_i32, %c0_i32_0 : i32, i32
  }
  func.func @transform_10(%arg0: i32) -> (i32, i32) {
    %c0_i32 = arith.constant 0 : i32
    %c0_i32_0 = arith.constant 0 : i32
    %c0_i32_1 = arith.constant 0 : i32
    return %c0_i32, %c0_i32_0 : i32, i32
  }
  func.func @transform_11(%arg0: i32) -> (i32, i32) {
    %c0_i32 = arith.constant 0 : i32
    %c0_i32_0 = arith.constant 0 : i32
    %c0_i32_1 = arith.constant 0 : i32
    return %c0_i32, %c0_i32_0 : i32, i32
  }
  func.func @transform_12(%arg0: i32) -> (i32, i32) {
    %c0_i32 = arith.constant 0 : i32
    %c0_i32_0 = arith.constant 0 : i32
    %c0_i32_1 = arith.constant 0 : i32
    return %c0_i32, %c0_i32_0 : i32, i32
  }
  func.func @transform_13(%arg0: i32) -> (i32, i32, i32) {
    %c0_i32 = arith.constant 0 : i32
    %c0_i32_0 = arith.constant 0 : i32
    %c0_i32_1 = arith.constant 0 : i32
    return %arg0, %c0_i32, %c0_i32_0 : i32, i32, i32
  }
  func.func @transform_14(%arg0: i32) -> (i32, i32, i32, i32) {
    %c0_i32 = arith.constant 0 : i32
    %c0_i32_0 = arith.constant 0 : i32
    %c0_i32_1 = arith.constant 0 : i32
    %c0_i32_2 = arith.constant 0 : i32
    return %arg0, %c0_i32, %c0_i32_0, %c0_i32_1 : i32, i32, i32, i32
  }
}

</mosaic_0001>

<bundles_post_ra>
// kernel: tpu_custom_call.1
= control target key start
LH: loop header
LB: loop body
LE: loop exit
PB: predicated region body
PF: predicated region fallthrough
CT: control target
= control target key end

     0   :  { %s2914_s0 = inlined_call_operand.vmem [shape: f32[2,8,32], index: 0, kind: input, shape index: {}]   ;;  %s2915_s1 = inlined_call_operand.vmem [shape: bf16[32,96], index: 1, kind: input, shape index: {}]   ;;  %s2916_s2 = inlined_call_operand.vmem [shape: f32[1,96], index: 2, kind: input, shape index: {}]   ;;  %s2917_s3 = inlined_call_operand.vmem [shape: bf16[32,32], index: 3, kind: input, shape index: {}]   ;;  %s2918_s4 = inlined_call_operand.vmem [shape: f32[1,32], index: 4, kind: input, shape index: {}]   ;;  %s2919_s5 = inlined_call_operand.vmem [shape: f32[1,32], index: 5, kind: input, shape index: {}]   ;;  %s2920_s6 = inlined_call_operand.vmem [shape: f32[1,32], index: 6, kind: input, shape index: {}]   ;;  %s2921_s7 = inlined_call_operand.hbm [shape: bf16[32,64], index: 7, kind: input, shape index: {}]   ;;  %s2922_s8 = inlined_call_operand.vmem [shape: f32[1,64], index: 8, kind: input, shape index: {}]   ;;  %s2923_s9 = inlined_call_operand.vmem [shape: bf16[64,32], index: 9, kind: input, shape index: {}]   ;;  %s2924_s10 = inlined_call_operand.vmem [shape: f32[1,32], index: 10, kind: input, shape index: {}]   ;;  %s2925_s11 = inlined_call_operand.vmem [shape: f32[1,32], index: 11, kind: input, shape index: {}]   ;;  %s2926_s12 = inlined_call_operand.vmem [shape: f32[1,32], index: 12, kind: input, shape index: {}]   ;;  %s2927_s13 = inlined_call_operand.hbm [shape: f32[2,8,32], index: 13, kind: output, shape index: {0}]   ;;  %s2928_s14 = inlined_call_operand.hbm [shape: f32[2,4,8,8], index: 14, kind: output, shape index: {1}]  }
   0x1   :  { %2937 = sst [smem:[#allocation15_spill]] %s2914_s0 }
   0x2   :  { %2938 = sst [smem:[#allocation16_spill]] %s2915_s1 }
   0x3   :  { %20 = vsyncpa [#allocation3], 0 }
   0x4   :  { %21 = vsyncpa [#allocation4], 0 }
   0x5   :  { %23 = vsyncpa [#allocation4 + $0x1], 0 }
   0x6   :  { %24 = vsyncpa [#allocation7], 0 }
   0x7   :  { %26 = vsyncpa [#allocation7 + $0x1], 0  ;;  %s2505_s29 = smov 0   ;;  %s2507_s30 = smov 0  }
   0x8   :  { %s2509_s15 = smov 0   ;;  %s2511_s16 = smov 0  }
   0x9 LB: > { %2939 = sst [smem:[#allocation11_spill]] %s2406_s15  ;;  %s2526_s17 = sadd.s32 4294967295, %s2410_s16   ;;  %s2410_s16 = sphi %s2511_s16, %s2957_s16   ;;  %s2406_s15 = sphi %s2509_s15, %s2959_s15   ;;  %s2402_s30 = sphi %s2507_s30, %s2961_s30   ;;  %s2398_s29 = sphi %s2505_s29, %s2960_s29  }
   0xa   : > { %s2015_s18 = sadd.s32 4294967294, %s2410_s16   ;;  %s2530_s19 = sadd.s32 1, %s2410_s16  }
   0xb   : > { %2940 = sst [smem:[#allocation12_spill]] %s2530_s19  ;;  %s317_s20 = sadd.s32 1, %s2406_s15 }
   0xc   : > { %s314_s21 = ssub.s32 %s2410_s16, %s2530_s19  ;;  %p327_p0 = scmp.ne.s32.totalorder %s2406_s15, %s2402_s30 }
   0xd   : > { %p315_p1 = scmp.eq.s32.totalorder %s314_s21, 0  ;;  %p328_p2 = scmp.eq.s32.totalorder %s2526_s17, 1 }
   0xe   : > { %p333_p3 = scmp.ne.s32.totalorder %s2402_s30, %s2398_s29  ;;  %p334_p4 = scmp.eq.s32.totalorder %s2015_s18, 1 }
   0xf   : > { %s2541_s22 = scalar_select %p315_p1, %s2406_s15, %s317_s20  }
  0x10   : > { %p2543_p5 = por %p328_p2, %p327_p0  ;;  %p2547_p6 = por %p334_p4, %p333_p3 }
  0x11   : > { %2941 = sst [smem:[#allocation13_spill]] %s2541_s22  ;;  %p2016_p7 = scmp.ge.s32.totalorder %s2410_s16, 1 }
  0x12   : > { %s2942_s23 = scalar_select %p2543_p5, 1, 0 }
  0x13   : > { %s2943_s24 = scalar_select %p2547_p6, 1, 0 }
  0x14   : > { %p367_p8 = scmp.lt.s32.totalorder %s2410_s16, 3  ;;  %p2933_p9 = scmp.eq.s32.totalorder %s2526_s17, 0 }
  0x15   : > { %2944 = sst [smem:[#allocation14_spill]] %s2943_s24  ;;  %s2412_s26 = smov [#allocation2]  }
  0x16   : > { %p2554_p10 = pnand %p2016_p7, %p367_p8  ;;  %s397_s27 = sshll.u32 %s2412_s26, 4  ;;  %s398_s27 = int_to_ptr.vmem [resolvable:$true] %s397_s27 }
  0x17   : > { %s2284_s21 = scalar_lea.hbm %s2921_s7, 256 }
  0x18   : > { %s2945_s25 = scalar_select %p2554_p10, 1, 0 }
  0x19   : > { %p2192_p11 = pneg %p2554_p10  ;;  %p2285_p13 = scmp.ne.s32.totalorder %s2921_s7, %s2284_s21 }
  0x1a   : > { %p2291_p3 = scmp.lt.u32.totalorder %s2284_s21, %s2921_s7 }
  0x1b   : > { %p2562_p12 = pnand %p2933_p9, %p2192_p11 }
  0x1d   : > { %p2286_p0 = pneg %p2562_p12 }
  0x1f   : > { %p2287_p1 = pnand %p2286_p0, %p2285_p13 }
  0x21   : > { %p2288_p2 = pneg %p2287_p1 }
  0x23   : > { %p2293_p4 = pnand %p2291_p3, %p2288_p2 }
  0x25   : > { %2296 = shalt.err (!%p2293_p4)
}
  0x26   : > { %s2297_s24 = scalar_lea.vmem %s398_s27, 256  ;;  %p2305_p9 = scmp.lt.s32.totalorder %s398_s27, %s398_s27 }
  0x27   : > { %p2298_p7 = scmp.ne.s32.totalorder %s398_s27, %s2297_s24  ;;  %p2306_p6 = scmp.lt.s32.totalorder %s2297_s24, %s2297_s24 }
  0x29   : > { %p2300_p8 = pnand %p2298_p7, %p2286_p0  ;;  %p2307_p5 = por %p2306_p6, %p2305_p9 }
  0x2b   : > { %p2301_p11 = pneg %p2300_p8 }
  0x2d   : > { %p2308_p10 = pnand %p2307_p5, %p2301_p11 }
  0x2f   : > { %2311 = shalt.err (!%p2308_p10)
}
  0x30   : > { %s2413_s15 = smov 64   ;;  %s2414_s22 = smov 4  }
  0x31   : > { %2195 = dma.hbm_to_vmem [thread:$0]  (!%p2562_p12), %s2921_s7, 256, %s398_s27, [#allocation3], %s2413_s15, %s2413_s15, %s2414_s22  }
  0x32   : > { %p2947_p13 = scmp.ne.s32.totalorder %s2945_s25, 0 }
  0x33   : > { %p2948_p1 = scmp.eq.s32.totalorder (!%p2947_p13), %s2526_s17, 0 }
  0x34   : > { %435 = sbr.rel (%p2947_p13) target bundleno = 2781 (0xadd), region = 72 }
  0x3b   : > { %2385 = dma.done.wait (%p2948_p1), [#allocation3], 256   ;;  %p2949_p0 = pmov %p2948_p1 }
  0x3c   : > { %p485_p5 = scmp.lt.s32.totalorder %s2526_s17, 1  ;;  %v2415_v0 = vmov 0.0   ;;  %vm2416_vm0 = vmmov 0   ;;  %s2950_s0 = sld [smem:[#allocation15_spill]]  ;;  %vm515_vm1 = vcmask 261120   ;;  %v575_v17 = vlaneseq }
  0x3d   : > { %2387 = vsyncadd (%p2949_p0), [#allocation3], 4294967040  ;;  %2100 = vmatprep.subr.bf16.mxu0 %v2415_v0  ;;  %2104 = vmatprep.mubr.msk.bf16.mxu0 %vm2416_vm0, %v2415_v0  ;;  %s2951_s1 = sld [smem:[#allocation16_spill]]  ;;  %v2024_v5 = vld [vmem:[%s2916_s2] ss:$0 sm:$0xff]  ;;  %s2419_s25 = smov 96  }
  0x3e   : > { %s486_s19 = scalar_select %p485_p5, %s2526_s17, 1  ;;  %2108 = vmatprep.subr.bf16.mxu1 %v2415_v0  ;;  %2110 = vmatprep.mubr.msk.bf16.mxu1 %vm2416_vm0, %v2415_v0  ;;  %v2421_v15 = vmov 1983009808   ;;  %v2422_v18 = vmov 1934713408   ;;  %v576_v21 = vshrl.u32 %v575_v17, 7 }
  0x3f   : > { %s2420_s27 = smov 112   ;;  %v573_v16 = vunpack.c.l.s4 %v2421_v15  ;;  %v605_v19 = vunpack.c.l.s4 %v2422_v18  ;;  %vm1017_vm2 = vcmask 64512   ;;  %s2708_s21 = sand.u32 1, %s2402_s30   ;;  %vm1261_vm3 = vcmask 1043456  }
  0x40   : > { %s2023_s24 = sshll.u32 %s486_s19, 3  ;;  %s2417_s19 = smov 104   ;;  %vm1592_vm4 = vcmask 130048   ;;  %vm1594_vm5 = vcmask 195584   ;;  %vm1802_vm6 = vcmask 523264  }
  0x41   : > { %v574_v20 = vunpack.c.0.s8 %v573_v16  ;;  %v606_v24 = vunpack.c.0.s8 %v605_v19  ;;  %s2022_s26 = sshll.u32 %s2708_s21, 5  ;;  %s2069_s18 = sshll.u32 %s2526_s17, 9 }
  0x42   : > { %s488_s28 = scalar_lea.vmem %s2950_s0, %s2023_s24  ;;  %s2418_s24 = smov 120  }
  0x43   : > { %v2254_v1 = vld [vmem:[%s2951_s1] sm:$0xff]   ;;  %v2255_v2 = vld [vmem:[%s2951_s1 + $0x8] sm:$0xff]   ;;  %v2633_v25 = vsub.s32 %v574_v20, %v576_v21  ;;  %v2635_v32 = vsub.s32 %v606_v24, %v576_v21  ;;  %s2715_s15 = scalar_lea.vmem [#allocation6], %s2022_s26  ;;  %p2952_p9 = scmp.ne.s32.totalorder %s2942_s23, 0 }
  0x44   : > { %2101 = vmatpush3.bf16.msra.mxu0 %v2254_v1  ;;  %v2605_v3 = vld [vmem:[%s488_s28] sm:$0xff]  ;;  %s2423_s28 = smov 64   ;;  %s1909_s22 = sshll.u32 %s2715_s15, 4  ;;  %s2827_s22 = int_to_ptr.vmem [resolvable:$true] %s1909_s22 }
  0x45   : > { %2102 = vmatprep.subr.bf16.mxu0 %v2415_v0  ;;  %v491_v4 = vpack.c.bf16 %v2605_v3, %v2605_v3  ;;  %s2427_s26 = smov [#allocation6]  }
  0x48   : > { %2103 = vmatpush3.bf16.msra.mxu0 %v2255_v2 }
  0x49   : > { %2114 = vmatprep.subr.bf16.mxu0 %v2415_v0 }
  0x4b   : > { %2105 = vmatmul.mubr.msk.bf16.vlgmr.msra.gmra.mrb[0].mxu0 %vm515_vm1, %v491_v4 }
  0x4c   : > { %2116 = vmatprep.mubr.msk.bf16.mxu0 %vm2416_vm0, %v2415_v0 }
 0x11e   : > { %v553_v6 = vpop.f32.mrb[0].mxu0 }
 0x11f   : > { %v2617_v7 = vadd.f32 %v2024_v5, %v553_v6  ;;  %v2106_v8 = vpop.f32.mrb[1].mxu0 }
 0x120   : > { %v556_v9 = vpop.f32.mrb[2].mxu0 }
 0x121   : > { %711 = vrot.lane.b32.xlu1 %v2617_v7, %s2417_s19  ;;  %707 = vrot.lane.b32.xlu0 %v2617_v7, %s2418_s24  ;;  %v2107_v10 = vpop.f32.mrb[3].mxu0  ;;  %v559_v14 = vmul.f32 0.35355338, %v2617_v7 }
 0x125   : > { %713 = vrot.lane.b32.xlu1 %v2617_v7, %s2419_s25  ;;  %709 = vrot.lane.b32.xlu0 %v2617_v7, %s2420_s27 }
 0x193   : > { %v2623_v11 = vpop.permute.xlu0 %707  ;;  %v2626_v12 = vpop.permute.xlu1 %711 }
 0x194   : > { %715 = vrot.lane.b32.xlu0 %v2623_v11, %s2419_s25 }
 0x197   : > { %v2628_v13 = vpop.permute.xlu0 %709  ;;  %v714_v22 = vpop.permute.xlu1 %713 }
 0x198   : > { %719 = vrot.lane.b32.xlu0 %v2626_v12, %s2419_s25  ;;  %717 = vrot.lane.b32.xlu1 %v2628_v13, %s2419_s25  ;;  %s2936_s25 = smov 8  }
 0x19c   : > { %564 = vrot.lane.b32.xlu0 %v559_v14, %s2420_s27  ;;  %561 = vrot.lane.b32.xlu1 %v559_v14, %s2418_s24  ;;  %s2424_s24 = smov 16   ;;  %s2426_s27 = smov 24  }
 0x1a0   : > { %567 = vrot.lane.b32.xlu1 %v559_v14, %s2417_s19 }
 0x206   : > { %v716_v23 = vpop.permute.xlu0 %715 }
 0x20a   : > { %v718_v26 = vpop.permute.xlu1 %717  ;;  %v720_v27 = vpop.permute.xlu0 %719 }
 0x20b   : > { %v725_v28 = vcombine.low %v714_v22, %v718_v26  ;;  %v726_v29 = vcombine.high %v714_v22, %v718_v26  ;;  %v741_v30 = vcombine.low %v716_v23, %v720_v27  ;;  %v742_v31 = vcombine.high %v716_v23, %v720_v27 }
 0x20d   : > { %v733_v33 = vrot.slane %v725_v28, %v2633_v25  ;;  %v740_v34 = vrot.slane %v726_v29, %v2633_v25  ;;  %v749_v35 = vrot.slane %v741_v30, %v2633_v25  ;;  %v756_v36 = vrot.slane %v742_v31, %v2633_v25 }
 0x20e   : > { %v562_v37 = vpop.permute.xlu1 %561  ;;  %v565_v42 = vpop.permute.xlu0 %564 }
 0x20f   : > { %v757_v38 = vcombine.low %v733_v33, %v749_v35  ;;  %v758_v39 = vcombine.high %v733_v33, %v749_v35  ;;  %v773_v40 = vcombine.low %v740_v34, %v756_v36  ;;  %v774_v41 = vcombine.high %v740_v34, %v756_v36 }
 0x210   : > { %v570_v47 = vcombine.low %v559_v14, %v565_v42  ;;  %v571_v48 = vcombine.high %v559_v14, %v565_v42 }
 0x211   : > { %v765_v43 = vrot.slane %v757_v38, %v2635_v32  ;;  %v772_v44 = vrot.slane %v758_v39, %v2635_v32  ;;  %v781_v45 = vrot.slane %v773_v40, %v2635_v32  ;;  %v788_v46 = vrot.slane %v774_v41, %v2635_v32 }
 0x212   : > { %v568_v49 = vpop.permute.xlu1 %567  ;;  %v578_v60 = vrot.slane %v570_v47, %v2633_v25  ;;  %v585_v61 = vrot.slane %v571_v48, %v2633_v25 }
 0x213   : > { %v793_v50 = vcombine.low %v765_v43, %v772_v44  ;;  %v2030_v51 = vcombine.high %v765_v43, %v772_v44  ;;  %v809_v52 = vcombine.low %v781_v45, %v788_v46  ;;  %v2031_v53 = vcombine.high %v781_v45, %v788_v46 }
 0x214   : > { %v586_v54 = vcombine.low %v562_v37, %v568_v49  ;;  %v587_v55 = vcombine.high %v562_v37, %v568_v49 }
 0x215   : > { %v800_v56 = vrot.slane %v793_v50, %v2633_v25  ;;  %v808_v57 = vrot.slane %v2030_v51, %v2633_v25  ;;  %v816_v58 = vrot.slane %v809_v52, %v2633_v25  ;;  %v824_v59 = vrot.slane %v2031_v53, %v2633_v25 }
 0x216   : > { %v594_v62 = vrot.slane %v586_v54, %v2633_v25  ;;  %v601_v63 = vrot.slane %v587_v55, %v2633_v25 }
 0x217   : > { %v825_v1 = vcombine.low %v800_v56, %v808_v57  ;;  %v841_v2 = vcombine.low %v816_v58, %v824_v59  ;;  %v826_v14 = vcombine.high %v800_v56, %v808_v57  ;;  %v842_v15 = vcombine.high %v816_v58, %v824_v59 }
 0x218   : > { %v602_v4 = vcombine.low %v578_v60, %v594_v62  ;;  %v603_v5 = vcombine.high %v578_v60, %v594_v62  ;;  %v618_v6 = vcombine.low %v585_v61, %v601_v63  ;;  %v619_v8 = vcombine.high %v585_v61, %v601_v63 }
 0x219   : > { %v833_v9 = vrot.slane %v825_v1, %v2635_v32  ;;  %v849_v10 = vrot.slane %v841_v2, %v2635_v32  ;;  %v840_v29 = vrot.slane %v826_v14, %v2635_v32  ;;  %v856_v30 = vrot.slane %v842_v15, %v2635_v32 }
 0x21a   : > { %v610_v16 = vrot.slane %v602_v4, %v2635_v32  ;;  %v617_v17 = vrot.slane %v603_v5, %v2635_v32  ;;  %v626_v18 = vrot.slane %v618_v6, %v2635_v32  ;;  %v633_v19 = vrot.slane %v619_v8, %v2635_v32 }
 0x21b   : > { %v857_v20 = vcombine.low %v833_v9, %v849_v10  ;;  %v858_v21 = vcombine.high %v833_v9, %v849_v10  ;;  %v859_v40 = vcombine.low %v840_v29, %v856_v30  ;;  %v860_v41 = vcombine.high %v840_v29, %v856_v30 }
 0x21c   : > { %v638_v22 = vcombine.low %v610_v16, %v617_v17  ;;  %v2028_v23 = vcombine.high %v610_v16, %v617_v17  ;;  %v654_v24 = vcombine.low %v626_v18, %v633_v19  ;;  %v2029_v26 = vcombine.high %v626_v18, %v633_v19 }
 0x21d   : > { %v1013_v27 = vpack.c.bf16 %v857_v20, %v857_v20  ;;  %v1014_v28 = vpack.c.bf16 %v858_v21, %v858_v21  ;;  %v1015_v48 = vpack.c.bf16 %v859_v40, %v859_v40  ;;  %v1016_v49 = vpack.c.bf16 %v860_v41, %v860_v41 }
 0x21e   : > { %v645_v31 = vrot.slane %v638_v22, %v2633_v25  ;;  %v653_v33 = vrot.slane %v2028_v23, %v2633_v25  ;;  %v661_v34 = vrot.slane %v654_v24, %v2633_v25  ;;  %v669_v35 = vrot.slane %v2029_v26, %v2633_v25 }
 0x21f   : > { %v1022_v36 = vsel %vm1017_vm2, %v1013_v27, 0  ;;  %v1068_v37 = vsel %vm1017_vm2, %v1014_v28, 0  ;;  %v1114_v54 = vsel %vm1017_vm2, %v1015_v48, 0  ;;  %v1160_v55 = vsel %vm1017_vm2, %v1016_v49, 0 }
 0x220   : > { %2109 = vmatpush3.bf16.xpose.msra.mxu1 %v1022_v36  ;;  %2115 = vmatpush3.bf16.xpose.msra.mxu0 %v1068_v37  ;;  %v670_v38 = vcombine.low %v645_v31, %v653_v33  ;;  %v686_v39 = vcombine.low %v661_v34, %v669_v35  ;;  %v671_v43 = vcombine.high %v645_v31, %v653_v33 }
 0x221   : > { %2120 = vmatprep.subr.bf16.mxu1 %v2415_v0  ;;  %2126 = vmatprep.subr.bf16.mxu0 %v2415_v0  ;;  %v687_v44 = vcombine.high %v661_v34, %v669_v35 }
 0x222   : > { %v678_v42 = vrot.slane %v670_v38, %v2635_v32  ;;  %v694_v45 = vrot.slane %v686_v39, %v2635_v32  ;;  %v685_v52 = vrot.slane %v671_v43, %v2635_v32 }
 0x223   : > { %v701_v53 = vrot.slane %v687_v44, %v2635_v32 }
 0x224   : > { %v702_v46 = vcombine.low %v678_v42, %v694_v45  ;;  %v703_v47 = vcombine.high %v678_v42, %v694_v45 }
 0x225   : > { %v704_v56 = vcombine.low %v685_v52, %v701_v53  ;;  %v705_v57 = vcombine.high %v685_v52, %v701_v53 }
 0x226   : > { %v1009_v50 = vpack.c.bf16 %v702_v46, %v702_v46  ;;  %v1010_v51 = vpack.c.bf16 %v703_v47, %v703_v47 }
 0x227   : > { %v1011_v58 = vpack.c.bf16 %v704_v56, %v704_v56  ;;  %v1012_v59 = vpack.c.bf16 %v705_v57, %v705_v57 }
 0x228   : > { %2111 = vmatmul.mubr.msk.bf16.vlgmr.msra.gmra.mrb[0].mxu1 %vm1017_vm2, %v1009_v50  ;;  %2117 = vmatmul.mubr.msk.bf16.vlgmr.msra.gmra.mrb[4].mxu0 %vm1017_vm2, %v1010_v51 }
 0x229   : > { %2121 = vmatpush3.bf16.xpose.msra.mxu1 %v1114_v54  ;;  %2127 = vmatpush3.bf16.xpose.msra.mxu0 %v1160_v55 }
 0x22a   : > { %2122 = vmatprep.mubr.msk.bf16.mxu1 %vm2416_vm0, %v2415_v0  ;;  %2128 = vmatprep.mubr.msk.bf16.mxu0 %vm2416_vm0, %v2415_v0 }
 0x22b   : > { %2132 = vmatprep.subr.bf16.mxu1 %v2415_v0  ;;  %2138 = vmatprep.subr.bf16.mxu0 %v2415_v0 }
 0x230   : > { %2123 = vmatmul.mubr.msk.bf16.vlgmr.msra.gmra.mrb[4].mxu1 %vm1017_vm2, %v1011_v58  ;;  %2129 = vmatmul.mubr.msk.bf16.vlgmr.msra.gmra.mrb[8].mxu0 %vm1017_vm2, %v1012_v59 }
 0x231   : > { %2134 = vmatprep.mubr.msk.bf16.mxu1 %vm2416_vm0, %v2415_v0  ;;  %2140 = vmatprep.mubr.msk.bf16.mxu0 %vm2416_vm0, %v2415_v0 }
 0x2fb   : > { %v1058_v60 = vpop.f32.mrb[0].mxu1  ;;  %v1104_v61 = vpop.f32.mrb[4].mxu0 }
 0x2fc   : > { %v2112_v62 = vpop.f32.mrb[1].mxu1  ;;  %v2118_v63 = vpop.f32.mrb[5].mxu0  ;;  %v1202_v1 = vsel %vm1017_vm2, %v1058_v60, -inf  ;;  %v1205_v2 = vsel %vm1017_vm2, %v1104_v61, -inf }
 0x2fd   : > { %1203 = vmax.xlane.f32.xlu0 %v1202_v1  ;;  %v1061_v4 = vpop.f32.mrb[2].mxu1  ;;  %1206 = vmax.xlane.f32.xlu1 %v1205_v2  ;;  %v1107_v5 = vpop.f32.mrb[6].mxu0 }
 0x2fe   : > { %v2113_v6 = vpop.f32.mrb[3].mxu1  ;;  %v2119_v8 = vpop.f32.mrb[7].mxu0 }
 0x303   : > { %v1150_v9 = vpop.f32.mrb[4].mxu1  ;;  %v1196_v10 = vpop.f32.mrb[8].mxu0 }
 0x304   : > { %v2124_v14 = vpop.f32.mrb[5].mxu1  ;;  %v2130_v15 = vpop.f32.mrb[9].mxu0  ;;  %v1208_v16 = vsel %vm1017_vm2, %v1150_v9, -inf  ;;  %v1211_v21 = vsel %vm1017_vm2, %v1196_v10, -inf }
 0x305   : > { %1209 = vmax.xlane.f32.xlu0 %v1208_v16  ;;  %v1153_v17 = vpop.f32.mrb[6].mxu1  ;;  %v1199_v18 = vpop.f32.mrb[10].mxu0 }
 0x306   : > { %v2125_v19 = vpop.f32.mrb[7].mxu1  ;;  %v2131_v20 = vpop.f32.mrb[11].mxu0 }
 0x309   : > { %1212 = vmax.xlane.f32.xlu0 %v1211_v21 }
 0x30e   : > { %861 = vrot.lane.b32.xlu1 %v2617_v7, %s2423_s28 }
 0x38a   : > { %v1204_v22 = vpop.xlane.xlu0 %1203  ;;  %v1207_v23 = vpop.xlane.xlu1 %1206 }
 0x38b   : > { %v1214_v24 = vsub.f32 %v1058_v60, %v1204_v22  ;;  %v1215_v26 = vsub.f32 %v1104_v61, %v1207_v23 }
 0x38d   : > { %v1218_v27 = vmul.f32 1.442695, %v1214_v24  ;;  %v1220_v28 = vmul.f32 1.442695, %v1215_v26 }
 0x38f   : > { %2264 = vpow2.f32 %v1218_v27 }
 0x390   : > { %2266 = vpow2.f32 %v1220_v28 }
 0x392   : > { %v1210_v7 = vpop.xlane.xlu0 %1209 }
 0x393   : > { %v1216_v34 = vsub.f32 %v1150_v9, %v1210_v7 }
 0x395   : > { %v1222_v37 = vmul.f32 1.442695, %v1216_v34 }
 0x396   : > { %v1213_v35 = vpop.xlane.xlu0 %1212 }
 0x397   : > { %v1217_v36 = vsub.f32 %v1196_v10, %v1213_v35  ;;  %2268 = vpow2.f32 %v1222_v37 }
 0x399   : > { %v2265_v29 = vpop.eup %2264  ;;  %v1224_v38 = vmul.f32 1.442695, %v1217_v36 }
 0x39a   : > { %v2267_v30 = vpop.eup %2266  ;;  %v1226_v31 = vsel %vm1017_vm2, %v2265_v29, 0.0 }
 0x39b   : > { %1227 = vadd.xlane.f32.xlu1 %v1226_v31  ;;  %v1229_v33 = vsel %vm1017_vm2, %v2267_v30, 0.0  ;;  %2270 = vpow2.f32 %v1224_v38 }
 0x39c   : > { %1230 = vadd.xlane.f32.xlu0 %v1229_v33 }
 0x3a1   : > { %v2699_v39 = vpop.eup %2268 }
 0x3a5   : > { %v2701_v40 = vpop.eup %2270 }
 0x3ac   : > { %865 = vrot.lane.b32.xlu1 %v2628_v13, %s2423_s28  ;;  %v1232_v13 = vsel %vm1017_vm2, %v2699_v39, 0.0 }
 0x3b0   : > { %867 = vrot.lane.b32.xlu1 %v2626_v12, %s2423_s28  ;;  %v862_v12 = vpop.permute.xlu1 %861 }
 0x3b2   : > { %863 = vrot.lane.b32.xlu0 %v2623_v11, %s2423_s28  ;;  %v1235_v11 = vsel %vm1017_vm2, %v2701_v40, 0.0  ;;  %s2312_s28 = scalar_lea.vmem %s2827_s22, 512 }
 0x3b3   : > { %p2313_p6 = scmp.ne.s32.totalorder %s2827_s22, %s2312_s28 }
 0x3b5   : > { %p2314_p10 = pnand %p2313_p6, %p2952_p9 }
 0x3b7   : > { %p2315_p12 = pneg %p2314_p10 }
 0x3d1   : > { %1233 = vadd.xlane.f32.xlu0 %v1232_v13 }
 0x3d4   : > { %1236 = vadd.xlane.f32.xlu1 %v1235_v11 }
 0x428   : > { %v1228_v41 = vpop.xlane.xlu1 %1227 }
 0x429   : > { %2272 = vrcp.f32 %v1228_v41  ;;  %v1231_v42 = vpop.xlane.xlu0 %1230 }
 0x42a   : > { %2274 = vrcp.f32 %v1231_v42 }
 0x42c   : > { %v866_v43 = vpop.permute.xlu1 %865 }
 0x42d   : > { %v873_v44 = vcombine.low %v862_v12, %v866_v43  ;;  %v874_v45 = vcombine.high %v862_v12, %v866_v43  ;;  %v864_v46 = vpop.permute.xlu0 %863 }
 0x42f   : > { %v881_v51 = vrot.slane %v873_v44, %v2633_v25  ;;  %v888_v52 = vrot.slane %v874_v45, %v2633_v25 }
 0x430   : > { %v868_v47 = vpop.permute.xlu1 %867 }
 0x431   : > { %v889_v48 = vcombine.low %v864_v46, %v868_v47  ;;  %v890_v49 = vcombine.high %v864_v46, %v868_v47 }
 0x433   : > { %v2273_v50 = vpop.eup %2272  ;;  %v897_v53 = vrot.slane %v889_v48, %v2633_v25  ;;  %v904_v54 = vrot.slane %v890_v49, %v2633_v25 }
 0x434   : > { %v2275_v55 = vpop.eup %2274  ;;  %v1242_v56 = vmul.f32 %v2273_v50, %v2265_v29 }
 0x435   : > { %v1243_v57 = vmul.f32 %v2275_v55, %v2267_v30  ;;  %v905_v58 = vcombine.low %v881_v51, %v897_v53  ;;  %v906_v59 = vcombine.high %v881_v51, %v897_v53  ;;  %v921_v60 = vcombine.low %v888_v52, %v904_v54 }
 0x436   : > { %v922_v61 = vcombine.high %v888_v52, %v904_v54  ;;  %1246 = vst.msk [vmem:[%s2715_s15] sm:$0xff] %vm1017_vm2, %v1242_v56  ;;  %v1250_v35 = vpack.c.bf16 %v1242_v56, %v1242_v56 }
 0x437   : > { %v913_v62 = vrot.slane %v905_v58, %v2635_v32  ;;  %v920_v63 = vrot.slane %v906_v59, %v2635_v32  ;;  %v929_v1 = vrot.slane %v921_v60, %v2635_v32  ;;  %1247 = vst.msk [vmem:[%s2715_s15 + $0x8] sm:$0xff] %vm1017_vm2, %v1243_v57  ;;  %v1251_v36 = vpack.c.bf16 %v1243_v57, %v1243_v57 }
 0x438   : > { %v936_v2 = vrot.slane %v922_v61, %v2635_v32 }
 0x439   : > { %v941_v4 = vcombine.low %v913_v62, %v920_v63  ;;  %v2032_v5 = vcombine.high %v913_v62, %v920_v63 }
 0x43a   : > { %v957_v6 = vcombine.low %v929_v1, %v936_v2  ;;  %v2033_v8 = vcombine.high %v929_v1, %v936_v2 }
 0x43b   : > { %v948_v9 = vrot.slane %v941_v4, %v2633_v25  ;;  %v956_v10 = vrot.slane %v2032_v5, %v2633_v25 }
 0x43c   : > { %v964_v14 = vrot.slane %v957_v6, %v2633_v25  ;;  %v972_v15 = vrot.slane %v2033_v8, %v2633_v25 }
 0x43d   : > { %v973_v16 = vcombine.low %v948_v9, %v956_v10  ;;  %v974_v17 = vcombine.high %v948_v9, %v956_v10 }
 0x43e   : > { %v989_v18 = vcombine.low %v964_v14, %v972_v15  ;;  %v990_v19 = vcombine.high %v964_v14, %v972_v15  ;;  %v2257_v15 = vld [vmem:[%s2917_s3 + $0x8] sm:$0xff]  }
 0x43f   : > { %v981_v20 = vrot.slane %v973_v16, %v2635_v32  ;;  %v988_v21 = vrot.slane %v974_v17, %v2635_v32 }
 0x440   : > { %v997_v22 = vrot.slane %v989_v18, %v2635_v32  ;;  %v1004_v23 = vrot.slane %v990_v19, %v2635_v32 }
 0x442   : > { %v1005_v24 = vcombine.low %v981_v20, %v997_v22  ;;  %v1006_v26 = vcombine.high %v981_v20, %v997_v22  ;;  %v1007_v27 = vcombine.low %v988_v21, %v1004_v23  ;;  %v1008_v28 = vcombine.high %v988_v21, %v1004_v23 }
 0x444   : > { %v1254_v29 = vpack.c.bf16 %v1005_v24, %v1005_v24  ;;  %v1255_v30 = vpack.c.bf16 %v1006_v26, %v1006_v26  ;;  %v1256_v7 = vpack.c.bf16 %v1007_v27, %v1007_v27  ;;  %v1257_v34 = vpack.c.bf16 %v1008_v28, %v1008_v28 }
 0x446   : > { %v1263_v31 = vsel %vm1261_vm3, %v1254_v29, 0  ;;  %v1309_v33 = vsel %vm1261_vm3, %v1255_v30, 0  ;;  %v1355_v37 = vsel %vm1261_vm3, %v1256_v7, 0  ;;  %v1401_v38 = vsel %vm1261_vm3, %v1257_v34, 0 }
 0x447   : > { %2133 = vmatpush3.bf16.msra.mxu1 %v1263_v31  ;;  %2139 = vmatpush3.bf16.msra.mxu0 %v1309_v33 }
 0x448   : > { %2144 = vmatprep.subr.bf16.mxu1 %v2415_v0  ;;  %2150 = vmatprep.subr.bf16.mxu0 %v2415_v0 }
 0x44a   : > { %2135 = vmatmul.mubr.msk.bf16.vlgmr.msra.gmra.mrb[8].mxu1 %vm1017_vm2, %v1250_v35  ;;  %2141 = vmatmul.mubr.msk.bf16.vlgmr.msra.gmra.mrb[12].mxu0 %vm1017_vm2, %v1251_v36 }
 0x44b   : > { %2145 = vmatpush3.bf16.msra.mxu1 %v1355_v37  ;;  %2151 = vmatpush3.bf16.msra.mxu0 %v1401_v38 }
 0x44c   : > { %2146 = vmatprep.mubr.msk.bf16.mxu1 %vm2416_vm0, %v2415_v0  ;;  %2152 = vmatprep.mubr.msk.bf16.mxu0 %vm2416_vm0, %v2415_v0 }
 0x44d   : > { %2156 = vmatprep.subr.bf16.mxu1 %v2415_v0  ;;  %2164 = vmatprep.subr.bf16.mxu0 %v2415_v0 }
 0x45e   : > { %v1234_v13 = vpop.xlane.xlu0 %1233 }
 0x45f   : > { %2276 = vrcp.f32 %v1234_v13 }
 0x461   : > { %v1237_v11 = vpop.xlane.xlu1 %1236 }
 0x462   : > { %2278 = vrcp.f32 %v1237_v11 }
 0x469   : > { %v2277_v12 = vpop.eup %2276 }
 0x46a   : > { %v1244_v41 = vmul.f32 %v2277_v12, %v2699_v39  ;;  %v2256_v39 = vld [vmem:[%s2917_s3] sm:$0xff]  }
 0x46c   : > { %v2279_v42 = vpop.eup %2278  ;;  %v1252_v43 = vpack.c.bf16 %v1244_v41, %v1244_v41  ;;  %1248 = vst.msk [vmem:[%s2715_s15 + $0x10] sm:$0xff] %vm1017_vm2, %v1244_v41 }
 0x46d   : > { %v1245_v44 = vmul.f32 %v2279_v42, %v2701_v40 }
 0x46e   : > { %2147 = vmatmul.mubr.msk.bf16.vlgmr.msra.gmra.mrb[12].mxu1 %vm1017_vm2, %v1252_v43 }
 0x46f   : > { %v1253_v45 = vpack.c.bf16 %v1245_v44, %v1245_v44  ;;  %2160 = vmatprep.mubr.msk.bf16.mxu1 %vm2416_vm0, %v2415_v0  ;;  %1249 = vst.msk [vmem:[%s2715_s15 + $0x18] sm:$0xff] %vm1017_vm2, %v1245_v44  ;;  %2157 = vmatpush3.bf16.msra.mxu1 %v2256_v39 }
 0x470   : > { %2158 = vmatprep.subr.bf16.mxu1 %v2415_v0 }
 0x471   : > { %2153 = vmatmul.mubr.msk.bf16.vlgmr.msra.gmra.mrb[16].mxu0 %vm1017_vm2, %v1253_v45  ;;  %v2044_v45 = vld [vmem:[%s2918_s4] ss:$0 sm:$0xff] }
 0x472   : > { %2168 = vmatprep.mubr.msk.bf16.mxu0 %vm2416_vm0, %v2415_v0 }
 0x473   : > { %2159 = vmatpush3.bf16.msra.mxu1 %v2257_v15 }
 0x474   : > { %2172 = vmatprep.subr.bf16.mxu1 %v2415_v0 }
 0x51d   : > { %v1299_v40 = vpop.f32.mrb[8].mxu1  ;;  %v1345_v46 = vpop.f32.mrb[12].mxu0 }
 0x51e   : > { %v2136_v47 = vpop.f32.mrb[9].mxu1  ;;  %v2142_v48 = vpop.f32.mrb[13].mxu0 }
 0x51f   : > { %v1302_v49 = vpop.f32.mrb[10].mxu1  ;;  %v1348_v50 = vpop.f32.mrb[14].mxu0 }
 0x520   : > { %v2137_v51 = vpop.f32.mrb[11].mxu1  ;;  %v2143_v52 = vpop.f32.mrb[15].mxu0 }
 0x541   : > { %v1391_v53 = vpop.f32.mrb[12].mxu1 }
 0x542   : > { %v1443_v54 = vcombine.low %v1299_v40, %v1391_v53  ;;  %v1444_v55 = vcombine.high %v1299_v40, %v1391_v53  ;;  %v2148_v56 = vpop.f32.mrb[13].mxu1 }
 0x543   : > { %v1394_v57 = vpop.f32.mrb[14].mxu1  ;;  %v2258_v56 = vld [vmem:[#allocation2] sm:$0xff]  }
 0x544   : > { %v2149_v58 = vpop.f32.mrb[15].mxu1  ;;  %v1437_v59 = vpop.f32.mrb[16].mxu0  ;;  %v1451_v1 = vrot.slane %v1443_v54, %v2633_v25  ;;  %v1458_v2 = vrot.slane %v1444_v55, %v2633_v25  ;;  %2165 = vmatpush3.bf16.msra.mxu0 %v2258_v56  ;;  %v2259_v57 = vld [vmem:[#allocation2 + $0x8] sm:$0xff]  }
 0x545   : > { %v1459_v60 = vcombine.low %v1345_v46, %v1437_v59  ;;  %v1460_v61 = vcombine.high %v1345_v46, %v1437_v59  ;;  %v2154_v62 = vpop.f32.mrb[17].mxu0  ;;  %2166 = vmatprep.subr.bf16.mxu0 %v2415_v0  ;;  %v2261_v58 = vld [vmem:[%s2923_s9 + $0x8] sm:$0xff]  }
 0x546   : > { %v1440_v63 = vpop.f32.mrb[18].mxu0 }
 0x547   : > { %v1467_v4 = vrot.slane %v1459_v60, %v2633_v25  ;;  %v1474_v5 = vrot.slane %v1460_v61, %v2633_v25  ;;  %v2155_v6 = vpop.f32.mrb[19].mxu0  ;;  %v2048_v63 = vld [vmem:[%s2919_s5] ss:$0 sm:$0xff] }
 0x548   : > { %2167 = vmatpush3.bf16.msra.mxu0 %v2259_v57 }
 0x549   : > { %v1475_v8 = vcombine.low %v1451_v1, %v1467_v4  ;;  %v1476_v9 = vcombine.high %v1451_v1, %v1467_v4  ;;  %v1491_v10 = vcombine.low %v1458_v2, %v1474_v5  ;;  %v1492_v14 = vcombine.high %v1458_v2, %v1474_v5  ;;  %v2049_v2 = vld [vmem:[%s2920_s6] ss:$0 sm:$0xff] }
 0x54b   : > { %v1483_v16 = vrot.slane %v1475_v8, %v2635_v32  ;;  %v1490_v17 = vrot.slane %v1476_v9, %v2635_v32  ;;  %v1499_v18 = vrot.slane %v1491_v10, %v2635_v32  ;;  %v1506_v19 = vrot.slane %v1492_v14, %v2635_v32  ;;  %v2262_v8 = vld [vmem:[%s2923_s9 + $0x10] sm:$0xff]   ;;  %v2263_v9 = vld [vmem:[%s2923_s9 + $0x18] sm:$0xff]   ;;  %v2050_v10 = vld [vmem:[%s2922_s8] ss:$0 sm:$0xff] }
 0x54d   : > { %v1511_v20 = vcombine.low %v1483_v16, %v1490_v17  ;;  %v2042_v21 = vcombine.high %v1483_v16, %v1490_v17  ;;  %v1527_v22 = vcombine.low %v1499_v18, %v1506_v19  ;;  %v2043_v23 = vcombine.high %v1499_v18, %v1506_v19 }
 0x54f   : > { %v1518_v24 = vrot.slane %v1511_v20, %v2633_v25  ;;  %v1526_v26 = vrot.slane %v2042_v21, %v2633_v25  ;;  %v1534_v27 = vrot.slane %v1527_v22, %v2633_v25  ;;  %v1542_v28 = vrot.slane %v2043_v23, %v2633_v25 }
 0x551   : > { %v1544_v29 = vcombine.high %v1518_v24, %v1526_v26  ;;  %v1560_v30 = vcombine.high %v1534_v27, %v1542_v28  ;;  %v1543_v31 = vcombine.low %v1518_v24, %v1526_v26  ;;  %v1559_v33 = vcombine.low %v1534_v27, %v1542_v28 }
 0x553   : > { %v1558_v7 = vrot.slane %v1544_v29, %v2635_v32  ;;  %v1574_v34 = vrot.slane %v1560_v30, %v2635_v32  ;;  %v1551_v35 = vrot.slane %v1543_v31, %v2635_v32  ;;  %v1567_v36 = vrot.slane %v1559_v33, %v2635_v32 }
 0x555   : > { %v1577_v37 = vcombine.low %v1558_v7, %v1574_v34  ;;  %v1576_v38 = vcombine.high %v1551_v35, %v1567_v36  ;;  %v1578_v13 = vcombine.high %v1558_v7, %v1574_v34  ;;  %v1575_v11 = vcombine.low %v1551_v35, %v1567_v36 }
 0x557   : > { %1584 = vrot.lane.b32.xlu1 %v1577_v37, %s2424_s24  ;;  %1580 = vrot.lane.b32.xlu0 %v1576_v38, %s2936_s25  ;;  %s2832_s24 = scalar_lea.hbm %s2928_s14, %s2069_s18  ;;  %s2316_s25 = sshll.u32 %s2427_s26, 4  ;;  %s2317_s25 = int_to_ptr.vmem [resolvable:$false] %s2316_s25 }
 0x558   : > { %s2318_s15 = scalar_lea.vmem %s2317_s25, 1024  ;;  %p2319_p2 = scmp.lt.s32.totalorder %s2827_s22, %s2317_s25 }
 0x559   : > { %p2320_p3 = scmp.lt.s32.totalorder %s2318_s15, %s2312_s28 }
 0x55b   : > { %1588 = vrot.lane.b32.xlu0 %v1578_v13, %s2426_s27  ;;  %p2321_p4 = por %p2320_p3, %p2319_p2 }
 0x55d   : > { %p2322_p7 = pnand %p2321_p4, %p2315_p12 }
 0x5c9   : > { %v1581_v25 = vpop.permute.xlu0 %1580  ;;  %v1585_v12 = vpop.permute.xlu1 %1584 }
 0x5ca   : > { %v1591_v41 = vsel %vm1017_vm2, %v1575_v11, %v1581_v25 }
 0x5cb   : > { %v1593_v43 = vsel %vm1592_vm4, %v1591_v41, %v1585_v12 }
 0x5cd   : > { %v1589_v42 = vpop.permute.xlu0 %1588 }
 0x5ce   : > { %v1595_v32 = vsel %vm1594_vm5, %v1593_v43, %v1589_v42 }
 0x5cf   : > { %v1596_v44 = vpack.c.bf16 %v1595_v32, %v1595_v32 }
 0x5d1   : > { %2161 = vmatmul.mubr.msk.bf16.vlgmr.msra.gmra.mrb[16].mxu1 %vm515_vm1, %v1596_v44 }
 0x5d2   : > { %2180 = vmatprep.mubr.msk.bf16.mxu1 %vm2416_vm0, %v2415_v0 }
 0x6a4   : > { %v1657_v39 = vpop.f32.mrb[16].mxu1 }
 0x6a5   : > { %v1658_v40 = vadd.f32 %v2044_v45, %v1657_v39  ;;  %v2162_v46 = vpop.f32.mrb[17].mxu1 }
 0x6a6   : > { %v1660_v47 = vpop.f32.mrb[18].mxu1 }
 0x6a7   : > { %v2163_v48 = vpop.f32.mrb[19].mxu1  ;;  %v1663_v49 = vadd.f32 %v1658_v40, %v2605_v3  ;;  %v2260_v3 = vld [vmem:[%s2923_s9] sm:$0xff]  }
 0x6a8   : > { %2173 = vmatpush3.bf16.msra.mxu1 %v2260_v3 }
 0x6a9   : > { %v1666_v50 = vsel %vm515_vm1, %v1663_v49, 0.0  ;;  %2174 = vmatprep.subr.bf16.mxu1 %v2415_v0 }
 0x6aa   : > { %1667 = vadd.xlane.f32.xlu1 %v1666_v50 }
 0x6ac   : > { %2175 = vmatpush3.bf16.msra.mxu1 %v2261_v58 }
 0x6ad   : > { %2176 = vmatprep.subr.bf16.mxu1 %v2415_v0 }
 0x6b0   : > { %2177 = vmatpush3.bf16.msra.mxu1 %v2262_v8 }
 0x6b1   : > { %2178 = vmatprep.subr.bf16.mxu1 %v2415_v0  ;;  %v2054_v0 = vld [vmem:[%s2924_s10] ss:$0 sm:$0xff] }
 0x6b4   : > { %2179 = vmatpush3.bf16.msra.mxu1 %v2263_v9 }
 0x737   : > { %v1668_v51 = vpop.xlane.xlu1 %1667 }
 0x738   : > { %v1670_v52 = vmul.f32 0.03125, %v1668_v51 }
 0x73a   : > { %v1671_v53 = vsub.f32 %v1663_v49, %v1670_v52 }
 0x73c   : > { %v1672_v54 = vmul.f32 %v1671_v53, %v1671_v53 }
 0x73e   : > { %v1673_v55 = vsel %vm515_vm1, %v1672_v54, 0.0 }
 0x73f   : > { %1674 = vadd.xlane.f32.xlu0 %v1673_v55 }
 0x7cc   : > { %v1675_v59 = vpop.xlane.xlu0 %1674 }
 0x7cd   : > { %v1676_v60 = vmul.f32 0.03125, %v1675_v59 }
 0x7cf   : > { %v1677_v61 = vadd.f32 1e-05, %v1676_v60 }
 0x7d1   : > { %2280 = vrsqrt.f32 %v1677_v61 }
 0x7db   : > { %v2281_v62 = vpop.eup %2280 }
 0x7dc   : > { %v1679_v1 = vmul.f32 %v2281_v62, %v1671_v53 }
 0x7de   : > { %v1686_v4 = vmul.f32 %v2048_v63, %v1679_v1 }
 0x7e0   : > { %v1693_v5 = vadd.f32 %v2049_v2, %v1686_v4 }
 0x7e2   : > { %v1694_v6 = vpack.c.bf16 %v1693_v5, %v1693_v5 }
 0x7e4   : > { %2169 = vmatmul.mubr.msk.bf16.vlgmr.msra.gmra.mrb[20].mxu0 %vm515_vm1, %v1694_v6 }
 0x8b7   : > { %v1755_v14 = vpop.f32.mrb[20].mxu0 }
 0x8b8   : > { %v1756_v15 = vadd.f32 %v2050_v10, %v1755_v14  ;;  %v2170_v16 = vpop.f32.mrb[21].mxu0 }
 0x8b9   : > { %v1758_v17 = vpop.f32.mrb[22].mxu0 }
 0x8ba   : > { %v1761_v18 = vmax.f32 %v1756_v15, 0.0  ;;  %v2171_v19 = vpop.f32.mrb[23].mxu0 }
 0x8bc   : > { %v1762_v20 = vpack.c.bf16 %v1761_v18, %v1761_v18 }
 0x8be   : > { %2181 = vmatmul.mubr.msk.bf16.vlgmr.msra.gmra.mrb[20].mxu1 %vm1802_vm6, %v1762_v20 }
 0x991   : > { %v1840_v21 = vpop.f32.mrb[20].mxu1 }
 0x992   : > { %v1841_v22 = vadd.f32 %v2054_v0, %v1840_v21  ;;  %v2182_v23 = vpop.f32.mrb[21].mxu1 }
 0x993   : > { %v1843_v24 = vpop.f32.mrb[22].mxu1 }
 0x994   : > { %v2183_v26 = vpop.f32.mrb[23].mxu1  ;;  %v1846_v27 = vadd.f32 %v1841_v22, %v1693_v5 }
 0x996   : > { %v1849_v28 = vsel %vm515_vm1, %v1846_v27, 0.0 }
 0x997   : > { %1850 = vadd.xlane.f32.xlu0 %v1849_v28 }
 0xa24   : > { %v1851_v29 = vpop.xlane.xlu0 %1850 }
 0xa25   : > { %v1852_v30 = vmul.f32 0.03125, %v1851_v29 }
 0xa27   : > { %v1853_v31 = vsub.f32 %v1846_v27, %v1852_v30 }
 0xa29   : > { %v1854_v33 = vmul.f32 %v1853_v31, %v1853_v31 }
 0xa2b   : > { %v1855_v7 = vsel %vm515_vm1, %v1854_v33, 0.0 }
 0xa2c   : > { %1856 = vadd.xlane.f32.xlu1 %v1855_v7 }
 0xa2d   : > { %2325 = shalt.err (!%p2322_p7)
}
 0xa2e   : > { %s2326_s18 = scalar_lea.hbm %s2832_s24, 512  ;;  %s2330_s26 = scalar_lea.hbm %s2928_s14, 1024 }
 0xa2f   : > { %p2327_p8 = scmp.ne.s32.totalorder %s2832_s24, %s2326_s18  ;;  %p2331_p1 = scmp.lt.u32.totalorder %s2832_s24, %s2928_s14 }
 0xa30   : > { %p2332_p0 = scmp.lt.u32.totalorder %s2330_s26, %s2326_s18  ;;  %p2334_p6 = scmp.lt.u32.totalorder %s2326_s18, %s2832_s24 }
 0xa31   : > { %p2328_p11 = pnand %p2327_p8, %p2952_p9 }
 0xa32   : > { %p2333_p5 = por %p2332_p0, %p2331_p1 }
 0xa33   : > { %p2329_p13 = pneg %p2328_p11 }
 0xa34   : > { %p2335_p10 = por %p2334_p6, %p2333_p5 }
 0xa36   : > { %p2336_p12 = pnand %p2335_p10, %p2329_p13 }
 0xa38   : > { %2339 = shalt.err (!%p2336_p12)
}
 0xa39   : > { %s2428_s28 = smov 128   ;;  %s2953_s15 = smov 8   ;;  %v2060_v38 = vld [vmem:[%s2925_s11] ss:$0 sm:$0xff] }
 0xa3a   : > { %s2954_s0 = scalar_lea.sflag [#allocation7], %s2708_s21  ;;  %s2021_s27 = sshll.u32 %s2708_s21, 3  ;;  %v2061_v11 = vld [vmem:[%s2926_s12] ss:$0 sm:$0xff] }
 0xa3b   : > { %2189 = dma.vmem_to_hbm [thread:$0]  (%p2952_p9), %s2827_s22, 512, %s2832_s24, %s2954_s0, %s2428_s28, %s2428_s28, %s2953_s15  }
 0xa3c   : > { %s2064_s25 = sshll.u32 %s2526_s17, 7  ;;  %s477_s1 = scalar_lea.vmem [#allocation5], %s2021_s27 }
 0xa3d   : > { %s1896_s0 = sshll.u32 %s477_s1, 4  ;;  %s2870_s28 = scalar_lea.hbm %s2927_s13, %s2064_s25  ;;  %s2872_s0 = int_to_ptr.vmem [resolvable:$true] %s1896_s0 }
 0xa3e   : > { %s1878_s15 = scalar_lea.sflag [#allocation4], %s2708_s21  ;;  %s2340_s18 = scalar_lea.vmem %s2872_s0, 128 }
 0xa3f   : > { %p2341_p2 = scmp.ne.s32.totalorder %s2872_s0, %s2340_s18  ;;  %s2429_s17 = smov [#allocation5]  }
 0xa40   : > { %s2344_s27 = sshll.u32 %s2429_s17, 4  ;;  %s2345_s27 = int_to_ptr.vmem [resolvable:$false] %s2344_s27 }
 0xa41   : > { %p2342_p3 = pnand %p2341_p2, %p2952_p9  ;;  %s2346_s20 = scalar_lea.vmem %s2345_s27, 256 }
 0xa42   : > { %p2347_p7 = scmp.lt.s32.totalorder %s2872_s0, %s2345_s27  ;;  %p2348_p8 = scmp.lt.s32.totalorder %s2346_s20, %s2340_s18 }
 0xa43   : > { %p2343_p4 = pneg %p2342_p3 }
 0xa44   : > { %p2349_p11 = por %p2348_p8, %p2347_p7 }
 0xa46   : > { %p2350_p13 = pnand %p2349_p11, %p2343_p4 }
 0xab9   : > { %v1857_v34 = vpop.xlane.xlu1 %1856 }
 0xaba   : > { %v1858_v35 = vmul.f32 0.03125, %v1857_v34 }
 0xabc   : > { %v1859_v36 = vadd.f32 1e-05, %v1858_v35 }
 0xabe   : > { %2282 = vrsqrt.f32 %v1859_v36 }
 0xac8   : > { %v2283_v37 = vpop.eup %2282 }
 0xac9   : > { %v1861_v13 = vmul.f32 %v2283_v37, %v1853_v31 }
 0xacb   : > { %v1868_v25 = vmul.f32 %v2060_v38, %v1861_v13 }
 0xacd   : > { %v1875_v12 = vadd.f32 %v2061_v11, %v1868_v25 }
 0xacf   : > { %1876 = vst.msk [vmem:[%s477_s1] sm:$0xff] %vm515_vm1, %v1875_v12 }
 0xad0   : > { %2353 = shalt.err (!%p2350_p13)
}
 0xad1   : > { %s2354_s1 = scalar_lea.hbm %s2870_s28, 128  ;;  %s2358_s26 = scalar_lea.hbm %s2927_s13, 256 }
 0xad2   : > { %p2355_p1 = scmp.ne.s32.totalorder %s2870_s28, %s2354_s1  ;;  %p2359_p6 = scmp.lt.u32.totalorder %s2870_s28, %s2927_s13 }
 0xad3   : > { %p2360_p10 = scmp.lt.u32.totalorder %s2358_s26, %s2354_s1  ;;  %p2362_p2 = scmp.lt.u32.totalorder %s2354_s1, %s2870_s28 }
 0xad4   : > { %p2356_p0 = pnand %p2355_p1, %p2952_p9 }
 0xad5   : > { %p2361_p12 = por %p2360_p10, %p2359_p6 }
 0xad6   : > { %p2357_p5 = pneg %p2356_p0 }
 0xad7   : > { %p2363_p3 = por %p2362_p2, %p2361_p12 }
 0xad9   : > { %p2364_p4 = pnand %p2363_p3, %p2357_p5 }
 0xadb   : > { %2367 = shalt.err (!%p2364_p4)
}
 0xadc   : > { %2188 = dma.vmem_to_hbm [thread:$0]  (%p2952_p9), %s2872_s0, 128, %s2870_s28, %s1878_s15  }
 0xadd PF: > { %s2955_s24 = sld [smem:[#allocation14_spill]]  ;;  %p2205_p7 = scmp.ge.s32.totalorder %s2410_s16, 2 }
 0xade   : > { %s1924_s18 = sand.u32 1, %s2398_s29  }
 0xadf   : > { %s1925_s17 = scalar_lea.sflag [#allocation4], %s1924_s18 }
 0xae3   : > { %p2956_p8 = scmp.ne.s32.totalorder %s2955_s24, 0 }
 0xae5   : > { %p2197_p11 = pnand %p2205_p7, %p2956_p8 }
 0xae7   : > { %2389 = dma.done.wait (!%p2197_p11), %s1925_s17, 128  }
 0xae8   : > { %2391 = vsyncadd (!%p2197_p11), %s1925_s17, 4294967168  ;;  %s1934_s27 = scalar_lea.sflag [#allocation7], %s1924_s18 }
 0xae9   : > { %2393 = dma.done.wait (!%p2197_p11), %s1934_s27, 512  }
 0xaea   : > { %2395 = vsyncadd (!%p2197_p11), %s1934_s27, 4294966784  ;;  %s2957_s16 = sld [smem:[#allocation12_spill]]  ;;  %s2958_s23 = sld [smem:[#allocation11_spill]] }
 0xaeb   : > { %s2959_s15 = sld [smem:[#allocation13_spill]]  ;;  %s2960_s29 = smov %s2402_s30 }
 0xaf0   : > { %p29_p9 = scmp.ge.s32.totalorder %s2957_s16, 4   ;;  %s2961_s30 = smov %s2958_s23 }
 0xaf2   :  { %31 = sbr.rel (!%p29_p9) target bundleno = 9 (0x9), region = 129 }
 0xaf9   :  { %1939 = vsyncpa [#allocation3], 1 }
 0xafa   :  { %1941 = vsyncpa [#allocation3 + $0x1], 1 }
 0xafb   :  { %1942 = vsyncpa [#allocation4], 1 }
 0xafc   :  { %1944 = vsyncpa [#allocation4 + $0x1], 1 }
 0xafd   :  { %1945 = vsyncpa [#allocation7], 1 }
 0xafe   :  { %1947 = vsyncpa [#allocation7 + $0x1], 1 }

</bundles_post_ra>
